<compile_context>
chip_gen: v7x
topology: tpu7x:2x2x1
jax: 0.10.0
libtpu: 0.0.40
codegen_flags: <defaults>
</compile_context>

<pallas_src>
import functools

import jax
import jax.numpy as jnp
from jax.experimental import pallas as pl
from jax.experimental.pallas import tpu as pltpu


def _round_up(x, m):
    return ((x + m - 1) // m) * m


def _dirichlet_kernel(x_ref, wt_ref, b_ref, o_ref, *, eps, fuse_softmax, group):
    """One row tile: out = log(clip(x)) @ W.T + b, optionally softmaxed per group.

    x_ref : (T, W) probabilities.  In the packed layout each 128-lane row holds
            W//group original samples (contiguous groups of `group` lanes).
    wt_ref: (W, W) weight (block-diagonal copies of W.T in the packed layout).
    b_ref : (1, W) bias (lane-tiled in the packed layout).
    """
    x = x_ref[...].astype(jnp.float32)
    logits = jnp.log(jnp.clip(x, eps, 1.0 - eps))                      # VPU + EUP
    out = jnp.dot(logits, wt_ref[...],
                  preferred_element_type=jnp.float32) + b_ref[...]     # MXU + bias

    if fuse_softmax:
        width = out.shape[-1]
        if group == width:
            # Class dim spans the whole lane axis: plain row softmax.
            m = jnp.max(out, axis=-1, keepdims=True)                   # XLU
            e = jnp.exp(out - m)                                       # EUP
            s = jnp.sum(e, axis=-1, keepdims=True)                     # XLU
        else:
            # Packed layout: segmented softmax over contiguous groups of
            # `group` lanes (small unrolled loop of masked full-width reduces;
            # the XLU work stays hidden under the HBM DMA).
            n_groups = width // group
            lane = jax.lax.broadcasted_iota(jnp.int32, out.shape, 1)
            gid = lane // group
            m = jnp.zeros_like(out)
            for g in range(n_groups):
                in_g = gid == g
                mg = jnp.max(jnp.where(in_g, out, -1e30), axis=-1, keepdims=True)
                m = jnp.where(in_g, mg, m)
            e = jnp.exp(out - m)
            s = jnp.zeros_like(out)
            for g in range(n_groups):
                in_g = gid == g
                sg = jnp.sum(jnp.where(in_g, e, 0.0), axis=-1, keepdims=True)
                s = jnp.where(in_g, sg, s)
        out = e / s    # exact divide (rows sum to 1); EUP cost hidden under DMA

    o_ref[...] = out.astype(o_ref.dtype)


def _vmem_budget_bytes():
    """Usable VMEM budget: ~3/4 of physical, capped at 96 MiB."""
    try:
        phys = int(pltpu.get_tpu_info().vmem_capacity_bytes)
    except Exception:
        phys = 64 * 1024 * 1024          # assume the smallest (v7x) part
    return min((phys * 3) // 4, 96 * 1024 * 1024)   # 48 MiB v7x, 96 MiB v5e/v6e


def _choose_row_tile(rows, bytes_per_row, sublane, row_cap, vmem_budget):
    """Largest sublane-aligned row tile that fits the VMEM byte budget."""
    tile = max(vmem_budget, 1 << 20) // bytes_per_row
    if row_cap is not None:
        tile = min(tile, row_cap)
    tile = min(tile, _round_up(rows, sublane))
    if rows > 2 * sublane:
        # Keep at least 2 grid steps so ("parallel",) shards across v7x's 2 TCs.
        tile = min(tile, _round_up(pl.cdiv(rows, 2), sublane))
    return max(sublane, (tile // sublane) * sublane)


def dirichlet_calibration(x, weight, bias, *, eps=1e-12, tn=None,
                          fuse_softmax=False):
    """out = log(clip(x, eps, 1-eps)) @ weight.T + bias (optionally row-softmaxed).

    `tn` optionally caps the row tile (in lane-rows of the kernel's 2-D layout).
    """
    N, K = x.shape
    assert weight.shape == (K, K) and bias.shape == (K,)
    in_item = jnp.dtype(x.dtype).itemsize
    out_item = in_item
    sublane = max(8, 32 // in_item)          # f32 -> 8, bf16 -> 16, int8/fp8 -> 32

    wt = jnp.asarray(weight, jnp.float32).T          # (K, K): kernel does logits @ W.T
    bias_f = jnp.asarray(bias, jnp.float32)

    # Lane-densify when the class dim underfills the 128 lanes and packing is a
    # free row-major reshape.
    # TODO(synk): K < 128 with 128 % K != 0 could also be packed by padding each
    # row to the next divisor of 128 (costs one extra pad pass over x in HBM);
    # those shapes currently take the standard (masked-store) path.
    # TODO(synk): very large K (W.T no longer fits VMEM) would need K-tiling of
    # the contraction; not required for typical calibration class counts.
    pack = (K < 128) and (128 % K == 0) and (K >= 8)
    if pack:
        p = 128 // K
        width = 128
        wt_big = jnp.kron(jnp.eye(p, dtype=jnp.float32), wt)        # (128, 128)
        b_big = jnp.tile(bias_f, p).reshape(1, width)
    else:
        p = 1
        width = K
        wt_big = wt
        b_big = bias_f.reshape(1, K)

    rows = pl.cdiv(N, p)                    # lane-rows of the (packed) 2-D problem
    lane_w = _round_up(width, 128)          # lane-padded width for VMEM accounting

    # Byte-budgeted tile: double-buffered in/out blocks + f32 temporaries per
    # row; weight/bias/slack are fixed costs.
    vmem_cap = _vmem_budget_bytes()
    f32_temps = 6 if fuse_softmax else 4
    bytes_per_row = lane_w * (2 * in_item + 2 * out_item + f32_temps * 4)
    fixed = 2 * width * width * 4 + lane_w * 4 + (4 << 20)
    tile = _choose_row_tile(rows, bytes_per_row, sublane, tn, vmem_cap - fixed)

    rows_pad = _round_up(rows, tile)
    n_pad = rows_pad * p
    x_p = x if n_pad == N else jnp.pad(x, ((0, n_pad - N), (0, 0)))
    x_p = x_p.reshape(rows_pad, width)      # free (row-major) reshape when packing

    kernel = functools.partial(_dirichlet_kernel, eps=float(eps),
                               fuse_softmax=fuse_softmax,
                               group=K if pack else width)

    out = pl.pallas_call(
        kernel,
        out_shape=jax.ShapeDtypeStruct((rows_pad, width), x.dtype),
        grid_spec=pltpu.PrefetchScalarGridSpec(
            num_scalar_prefetch=0,
            grid=(rows_pad // tile,),
            in_specs=[
                pl.BlockSpec((tile, width), lambda i: (i, 0)),
                # Grid-invariant blocks never re-DMA -> single buffer saves VMEM.
                pl.BlockSpec((width, width), lambda i: (0, 0),
                             pipeline_mode=pl.Buffered(1)),
                pl.BlockSpec((1, width), lambda i: (0, 0),
                             pipeline_mode=pl.Buffered(1)),
            ],
            out_specs=pl.BlockSpec((tile, width), lambda i: (i, 0)),
        ),
        compiler_params=pltpu.CompilerParams(
            dimension_semantics=("parallel",),   # rows independent; v7x TC sharding
            vmem_limit_bytes=vmem_cap,
        ),
        cost_estimate=pl.CostEstimate(
            flops=2 * rows_pad * width * width + rows_pad * width,
            transcendentals=rows_pad * width * (2 if fuse_softmax else 1),
            bytes_accessed=(rows_pad * width * (in_item + out_item)
                            + width * width * 4 + width * 4),
        ),
    )(x_p, wt_big, b_big)

    out = out.reshape(n_pad, K) if pack else out
    return out if n_pad == N else out[:N]


def evaluate(x, weight, bias, *, eps=1e-12, tn=None):
    """DirichletCalibration.evaluate: softmax(forward(x), dim=1), fused in-kernel."""
    # TODO(synk): the PyTorch evaluate() applies log(clip(.)) to the input and
    # then forward() applies it again (double log-clip, a reference bug); we
    # apply it once, matching forward()'s semantics.
    return dirichlet_calibration(x, weight, bias, eps=eps, tn=tn,
                                 fuse_softmax=True)


if __name__ == "__main__":
    eps = 1e-12
    k1, k2, k3, k4, k5, k6 = jax.random.split(jax.random.PRNGKey(0), 6)

    # ---- Case 1: K = 32 (< 128, divides 128) -> lane-dense packed path. ----
    N, K = 50, 32                      # non-multiple-of-8 batch exercises padding
    x = jax.nn.softmax(jax.random.normal(k1, (N, K), jnp.float32), axis=1)
    bound = 1.0 / (K ** 0.5)
    weight = jax.random.uniform(k2, (K, K), jnp.float32, -bound, bound)
    bias = jax.random.uniform(k3, (K,), jnp.float32, -bound, bound)

    # Small row cap so the tiny demo still runs a multi-step grid.
    out = jax.block_until_ready(
        dirichlet_calibration(x, weight, bias, eps=eps, tn=8))
    logits_ref = jnp.log(jnp.clip(x, eps, 1.0 - eps))
    ref = logits_ref @ weight.T + bias
    assert out.shape == (N, K)
    assert jnp.allclose(out, ref, rtol=1e-2, atol=1e-2), "forward mismatch (packed)"

    probs = jax.block_until_ready(evaluate(x, weight, bias, eps=eps, tn=8))
    probs_ref = jax.nn.softmax(ref, axis=1)
    assert jnp.allclose(probs, probs_ref, rtol=1e-2, atol=5e-3), "softmax mismatch (packed)"
    assert jnp.allclose(jnp.sum(probs, axis=1), 1.0, atol=1e-3)

    # ---- Case 2: K = 160 (>= 128, not a 128 multiple) -> standard path. ----
    N2, K2 = 37, 160
    x2 = jax.nn.softmax(jax.random.normal(k4, (N2, K2), jnp.float32), axis=1)
    bound2 = 1.0 / (K2 ** 0.5)
    w2 = jax.random.uniform(k5, (K2, K2), jnp.float32, -bound2, bound2)
    b2 = jax.random.uniform(k6, (K2,), jnp.float32, -bound2, bound2)

    out2 = jax.block_until_ready(dirichlet_calibration(x2, w2, b2, eps=eps))
    ref2 = jnp.log(jnp.clip(x2, eps, 1.0 - eps)) @ w2.T + b2
    assert jnp.allclose(out2, ref2, rtol=2e-2, atol=2e-2), "forward mismatch (standard)"

    probs2 = jax.block_until_ready(evaluate(x2, w2, b2, eps=eps))
    probs2_ref = jax.nn.softmax(ref2, axis=1)
    assert jnp.allclose(probs2, probs2_ref, rtol=2e-2, atol=5e-3), "softmax mismatch (standard)"

    print("KERNEL_OK")
</pallas_src>

<mosaic_0001>
module attributes {stable_mosaic.version = 11 : i64} {
  func.func @_dirichlet_kernel(%arg0: i32, %arg1: memref<8x128xf32, #tpu.memory_space<vmem>>, %arg2: memref<128x128xf32, #tpu.memory_space<vmem>>, %arg3: memref<1x128xf32, #tpu.memory_space<vmem>>, %arg4: memref<8x128xf32, #tpu.memory_space<vmem>>) attributes {dimension_semantics = [#tpu.dimension_semantics<parallel>], iteration_bounds = array<i64: 2>, scalar_prefetch = 0 : i64, scratch_operands = 0 : i64, tpu.core_type = #tpu.core_type<tc>, window_params = [{transform_indices = @transform_0, window_bounds = array<i64: 8, 128>}, {pipeline_mode = #tpu.pipeline_mode<synchronous>, transform_indices = @transform_1, window_bounds = array<i64: 128, 128>}, {pipeline_mode = #tpu.pipeline_mode<synchronous>, transform_indices = @transform_2, window_bounds = array<i64: 1, 128>}, {transform_indices = @transform_3, window_bounds = array<i64: 8, 128>}]} {
    %c0 = arith.constant 0 : index
    %c0_0 = arith.constant 0 : index
    %0 = vector.load %arg1[%c0, %c0_0] : memref<8x128xf32, #tpu.memory_space<vmem>>, vector<8x128xf32>
    %cst = arith.constant 9.99999996E-13 : f32
    %cst_1 = arith.constant 1.000000e+00 : f32
    %1 = vector.broadcast %cst : f32 to vector<8x128xf32>
    %2 = arith.maximumf %1, %0 : vector<8x128xf32>
    %3 = vector.broadcast %cst_1 : f32 to vector<8x128xf32>
    %4 = arith.minimumf %3, %2 : vector<8x128xf32>
    %5 = math.log %4 : vector<8x128xf32>
    %c0_2 = arith.constant 0 : index
    %c0_3 = arith.constant 0 : index
    %6 = vector.load %arg2[%c0_2, %c0_3] : memref<128x128xf32, #tpu.memory_space<vmem>>, vector<128x128xf32>
    %cst_4 = arith.constant dense<0.000000e+00> : vector<8x128xf32>
    %7 = tpu.matmul %5, %6, %cst_4 {dimension_numbers = #tpu.dot_dimension_numbers<[1], [0], [0], [1], [0, 0, 1, 1], [], []>} : vector<8x128xf32>, vector<128x128xf32>, vector<8x128xf32> -> vector<8x128xf32>
    %c0_5 = arith.constant 0 : index
    %c0_6 = arith.constant 0 : index
    %8 = vector.load %arg3[%c0_5, %c0_6] : memref<1x128xf32, #tpu.memory_space<vmem>>, vector<1x128xf32>
    %9 = vector.broadcast %8 : vector<1x128xf32> to vector<8x128xf32>
    %10 = arith.addf %7, %9 : vector<8x128xf32>
    %c0_7 = arith.constant 0 : index
    %c0_8 = arith.constant 0 : index
    %11 = vector.load %arg4[%c0_7, %c0_8] : memref<8x128xf32, #tpu.memory_space<vmem>>, vector<8x128xf32>
    tpu.vector_store %arg4[%c0_7, %c0_8], %10 {strides = array<i32>} : memref<8x128xf32, #tpu.memory_space<vmem>>, vector<8x128xf32>,
    return
  }
  func.func @transform_0(%arg0: i32) -> (i32, i32) {
    %c0_i32 = arith.constant 0 : i32
    %c0_i32_0 = arith.constant 0 : i32
    return %arg0, %c0_i32 : i32, i32
  }
  func.func @transform_1(%arg0: i32) -> (i32, i32) {
    %c0_i32 = arith.constant 0 : i32
    %c0_i32_0 = arith.constant 0 : i32
    %c0_i32_1 = arith.constant 0 : i32
    return %c0_i32, %c0_i32_0 : i32, i32
  }
  func.func @transform_2(%arg0: i32) -> (i32, i32) {
    %c0_i32 = arith.constant 0 : i32
    %c0_i32_0 = arith.constant 0 : i32
    %c0_i32_1 = arith.constant 0 : i32
    return %c0_i32, %c0_i32_0 : i32, i32
  }
  func.func @transform_3(%arg0: i32) -> (i32, i32) {
    %c0_i32 = arith.constant 0 : i32
    %c0_i32_0 = arith.constant 0 : i32
    return %arg0, %c0_i32 : i32, i32
  }
}

</mosaic_0001>

<bundles_post_ra>
// kernel: tpu_custom_call.1
= control target key start
LH: loop header
LB: loop body
LE: loop exit
PB: predicated region body
PF: predicated region fallthrough
CT: control target
= control target key end

     0   :  { %8 = vsyncpa [#allocation3], 0  ;;  %s910_s0 = inlined_call_operand.hbm [shape: f32[16,128], index: 0, kind: input, shape index: {}]   ;;  %s911_s1 = inlined_call_operand.hbm [shape: f32[128,128], index: 1, kind: input, shape index: {}]   ;;  %s912_s2 = inlined_call_operand.vmem [shape: f32[1,128], index: 2, kind: input, shape index: {}]   ;;  %s913_s3 = inlined_call_operand.hbm [shape: f32[16,128], index: 3, kind: output, shape index: {}]  }
   0x1   :  { %10 = vsyncpa [#allocation3 + $0x1], 0 }
   0x2   :  { %11 = vsyncpa [#allocation6], 0 }
   0x3   :  { %12 = vsyncpa [#allocation4], 0 }
   0x4   :  { %14 = vsyncpa [#allocation4 + $0x1], 0  ;;  %s707_s12 = smov 0   ;;  %s709_s13 = smov 0  }
   0x5   :  { %s711_s14 = smov 0   ;;  %s713_s15 = smov 0  }
   0x6 LB: > { %s728_s16 = sadd.s32 4294967295, %s677_s15   ;;  %s394_s17 = sadd.s32 4294967294, %s677_s15   ;;  %s677_s15 = sphi %s713_s15, %s933_s15   ;;  %s673_s14 = sphi %s711_s14, %s932_s14   ;;  %s669_s13 = sphi %s709_s13, %s931_s13   ;;  %s665_s12 = sphi %s707_s12, %s930_s12  }
   0x7   : > { %p40_p0 = scmp.ne.s32.totalorder %s669_s13, %s665_s12  ;;  %p914_p1 = scmp.eq.s32.totalorder %s728_s16, 0 }
   0x8   : > { %p112_p3 = scmp.eq.s32.totalorder %s394_s17, 1  ;;  %p395_p5 = scmp.ge.s32.totalorder %s677_s15, 1 }
   0x9   : > { %p737_p4 = por %p914_p1, %p40_p0  ;;  %p119_p7 = scmp.lt.s32.totalorder %s677_s15, 3 }
   0xa   : > { %p742_p6 = por %p112_p3, %p40_p0  ;;  %s679_s21 = smov [#allocation5]  }
   0xb   : > { %s917_s18 = scalar_select %p737_p4, 1, 0 }
   0xc   : > { %s918_s19 = scalar_select %p742_p6, 1, 0 }
   0xd   : > { %p747_p8 = pnand %p395_p5, %p119_p7  ;;  %s131_s22 = sshll.u32 %s679_s21, 4  ;;  %s751_s22 = int_to_ptr.vmem [resolvable:$true] %s131_s22 }
   0xe   : > { %s763_s24 = sadd.s32 1, %s677_s15   ;;  %s27_s25 = sadd.s32 1, %s673_s14 }
   0xf   : > { %s919_s20 = scalar_select %p747_p8, 1, 0 }
  0x10   : > { %p493_p9 = pneg %p747_p8  ;;  %s24_s26 = ssub.s32 %s677_s15, %s763_s24 }
  0x11   : > { %s549_s29 = scalar_lea.hbm %s911_s1, 2048 }
  0x12   : > { %p758_p11 = pnand %p493_p9, %p914_p1  ;;  %p550_p12 = scmp.ne.s32.totalorder %s911_s1, %s549_s29 }
  0x13   : > { %p556_p5 = scmp.lt.u32.totalorder %s549_s29, %s911_s1 }
  0x14   : > { %p551_p13 = pneg %p758_p11 }
  0x16   : > { %p552_p0 = pnand %p551_p13, %p550_p12 }
  0x18   : > { %p553_p3 = pneg %p552_p0 }
  0x1a   : > { %p558_p7 = pnand %p556_p5, %p553_p3 }
  0x1c   : > { %561 = shalt.err (!%p558_p7)
}
  0x1d   : > { %s562_s7 = scalar_lea.vmem %s751_s22, 2048  ;;  %p570_p2 = scmp.lt.s32.totalorder %s751_s22, %s751_s22 }
  0x1e   : > { %p563_p9 = scmp.ne.s32.totalorder %s751_s22, %s562_s7  ;;  %p571_p6 = scmp.lt.s32.totalorder %s562_s7, %s562_s7 }
  0x20   : > { %p565_p10 = pnand %p563_p9, %p551_p13  ;;  %p572_p4 = por %p571_p6, %p570_p2 }
  0x22   : > { %p566_p1 = pneg %p565_p10 }
  0x24   : > { %p573_p8 = pnand %p572_p4, %p566_p1 }
  0x26   : > { %576 = shalt.err (!%p573_p8)
}
  0x27   : > { %s680_s8 = smov 128   ;;  %s681_s9 = smov 8  }
  0x28   : > { %496 = dma.hbm_to_vmem [thread:$0]  (!%p758_p11), %s911_s1, 2048, %s751_s22, [#allocation6], %s680_s8, %s680_s8, %s681_s9  }
  0x29   : > { %p25_p2 = scmp.eq.s32.totalorder %s24_s26, 0  ;;  %p34_p1 = scmp.ne.s32.totalorder %s673_s14, %s669_s13 }
  0x2a   : > { %p35_p4 = scmp.eq.s32.totalorder %s677_s15, 0  ;;  %p506_p6 = scmp.lt.s32.totalorder %s677_s15, 2 }
  0x2b   : > { %s794_s17 = scalar_select %p25_p2, %s673_s14, %s27_s25  }
  0x2c   : > { %p36_p8 = por %p35_p4, %p34_p1  ;;  %p921_p10 = scmp.eq.s32.totalorder %s728_s16, 1 }
  0x2d   : > { %s148_s27 = sand.u32 1, %s673_s14   ;;  %s399_s28 = sshll.u32 %s677_s15, 7 }
  0x2e   : > { %p798_p12 = por %p921_p10, %p34_p1  ;;  %s398_s29 = sshll.u32 %s148_s27, 3 }
  0x2f   : > { %s807_s4 = scalar_lea.hbm %s910_s0, %s399_s28  ;;  %s152_s22 = scalar_lea.vmem [#allocation2], %s398_s29 }
  0x30   : > { %s159_s25 = sshll.u32 %s152_s22, 4  ;;  %p809_p11 = pnand %p506_p6, %p36_p8  ;;  %s813_s25 = int_to_ptr.vmem [resolvable:$true] %s159_s25 }
  0x31   : > { %s149_s5 = scalar_lea.sflag [#allocation3], %s148_s27  ;;  %s577_s6 = scalar_lea.hbm %s807_s4, 128 }
  0x32   : > { %p578_p13 = scmp.ne.s32.totalorder %s807_s4, %s577_s6  ;;  %p579_p0 = pneg %p809_p11 }
  0x33   : > { %s582_s9 = scalar_lea.hbm %s910_s0, 256  ;;  %p583_p7 = scmp.lt.u32.totalorder %s807_s4, %s910_s0 }
  0x34   : > { %p580_p3 = pnand %p579_p0, %p578_p13  ;;  %p584_p9 = scmp.lt.u32.totalorder %s582_s9, %s577_s6 }
  0x35   : > { %p586_p1 = scmp.lt.u32.totalorder %s577_s6, %s807_s4 }
  0x36   : > { %p581_p5 = pneg %p580_p3  ;;  %p585_p2 = por %p584_p9, %p583_p7 }
  0x38   : > { %p587_p4 = por %p586_p1, %p585_p2 }
  0x3a   : > { %p588_p6 = pnand %p587_p4, %p581_p5 }
  0x3c   : > { %591 = shalt.err (!%p588_p6)
}
  0x3d   : > { %s592_s27 = scalar_lea.vmem %s813_s25, 128  ;;  %s682_s28 = smov [#allocation2]  }
  0x3e   : > { %p593_p8 = scmp.ne.s32.totalorder %s813_s25, %s592_s27  ;;  %s597_s29 = sshll.u32 %s682_s28, 4  ;;  %s598_s29 = int_to_ptr.vmem [resolvable:$false] %s597_s29 }
  0x3f   : > { %s599_s23 = scalar_lea.vmem %s598_s29, 256  ;;  %p600_p3 = scmp.lt.s32.totalorder %s813_s25, %s598_s29 }
  0x40   : > { %p595_p10 = pnand %p593_p8, %p579_p0  ;;  %p601_p7 = scmp.lt.s32.totalorder %s599_s23, %s592_s27 }
  0x42   : > { %p596_p13 = pneg %p595_p10  ;;  %p602_p9 = por %p601_p7, %p600_p3 }
  0x44   : > { %p603_p2 = pnand %p602_p9, %p596_p13 }
  0x46   : > { %606 = shalt.err (!%p603_p2)
}
  0x47   : > { %500 = dma.hbm_to_vmem [thread:$0]  (!%p809_p11), %s807_s4, 128, %s813_s25, %s149_s5  }
  0x48   : > { %p924_p5 = scmp.ne.s32.totalorder %s919_s20, 0 }
  0x49   : > { %s843_s30 = sand.u32 (!%p924_p5), 1, %s669_s13   ;;  %p925_p0 = scmp.ne.s32.totalorder (!%p924_p5), %s917_s18, 0 }
  0x4a   : > { %168 = sbr.rel (%p924_p5) target bundleno = 347 (0x15b), region = 32  ;;  %s401_s22 = sshll.u32 (!%p924_p5), %s843_s30, 3 }
  0x4b   : > { %s171_s6 = scalar_lea.sflag (!%p924_p5), [#allocation3], %s843_s30  ;;  %s174_s7 = scalar_lea.vmem (!%p924_p5), [#allocation2], %s401_s22 }
  0x51   : > { %652 = dma.done.wait (%p925_p0), %s171_s6, 128  }
  0x52   : > { %654 = vsyncadd (%p925_p0), %s171_s6, 4294967168  ;;  %p926_p11 = scmp.eq.s32.totalorder %s728_s16, 0 }
  0x54   : > { %656 = dma.done.wait (%p926_p11), [#allocation6], 2048   ;;  %p927_p1 = pmov %p926_p11 }
  0x55   : > { %v683_v0 = vmov 0.0|0.0   ;;  %vm684_vm0 = vmmov 0   ;;  %v685_v1 = vmov 0.0   ;;  %v206_v2 = vld [vmem:[#allocation5] sm:$0xff]  ;;  %v207_v3 = vld [vmem:[#allocation5 + $0x8] sm:$0xff]  ;;  %v208_v4 = vld [vmem:[#allocation5 + $0x10] sm:$0xff] }
  0x56   : > { %658 = vsyncadd (%p927_p1), [#allocation6], 4294965248  ;;  %461 = vmatprep.subr.bf16.mxu0 %v683_v0  ;;  %458 = vmatprep.mubr.msk.f32.mxu0 %vm684_vm0, %v685_v1  ;;  %v462_v5 = vpack.c.bf16 %v207_v3, %v206_v2  ;;  %v209_v6 = vld [vmem:[#allocation5 + $0x18] sm:$0xff]  ;;  %v210_v8 = vld [vmem:[#allocation5 + $0x20] sm:$0xff]  ;;  %s406_s4 = sshll.u32 %s728_s16, 7  ;;  %s200_s25 = scalar_lea.vmem [#allocation7], %s401_s22 }
  0x57   : > { %v465_v7 = vpack.c.bf16 %v209_v6, %v208_v4  ;;  %v211_v9 = vld [vmem:[#allocation5 + $0x28] sm:$0xff]  ;;  %v201_v10 = vld [vmem:[%s174_s7] sm:$0xff]  ;;  %v214_v16 = vld [vmem:[#allocation5 + $0x40] sm:$0xff]  ;;  %s314_s26 = sshll.u32 %s200_s25, 4  ;;  %s866_s9 = scalar_lea.hbm %s913_s3, %s406_s4  ;;  %s868_s26 = int_to_ptr.vmem [resolvable:$true] %s314_s26 }
  0x58   : > { %463 = vmatpush3.bf16.msra.mxu0 %v462_v5  ;;  %v468_v11 = vpack.c.bf16 %v211_v9, %v210_v8  ;;  %v212_v12 = vld [vmem:[#allocation5 + $0x30] sm:$0xff]  ;;  %v213_v13 = vld [vmem:[#allocation5 + $0x38] sm:$0xff]  ;;  %v202_v14 = vmax.f32 %v201_v10, 1e-12  ;;  %v215_v17 = vld [vmem:[#allocation5 + $0x48] sm:$0xff]  ;;  %s301_s10 = scalar_lea.sflag [#allocation4], %s843_s30 }
  0x59   : > { %464 = vmatprep.subr.bf16.mxu0 %v683_v0  ;;  %v471_v15 = vpack.c.bf16 %v213_v13, %v212_v12  ;;  %v474_v19 = vpack.c.bf16 %v215_v17, %v214_v16  ;;  %v216_v20 = vld [vmem:[#allocation5 + $0x50] sm:$0xff]  ;;  %v217_v21 = vld [vmem:[#allocation5 + $0x58] sm:$0xff]  ;;  %v218_v23 = vld [vmem:[#allocation5 + $0x60] sm:$0xff]  ;;  %s607_s11 = scalar_lea.vmem %s868_s26, 128  ;;  %s686_s16 = smov [#allocation7]  }
  0x5a   : > { %v203_v18 = vmin.f32 %v202_v14, 1.0  ;;  %v477_v22 = vpack.c.bf16 %v217_v21, %v216_v20  ;;  %v219_v24 = vld [vmem:[#allocation5 + $0x68] sm:$0xff]  ;;  %v220_v26 = vld [vmem:[#allocation5 + $0x70] sm:$0xff]  ;;  %v221_v27 = vld [vmem:[#allocation5 + $0x78] sm:$0xff]  ;;  %p608_p4 = scmp.ne.s32.totalorder %s868_s26, %s607_s11  ;;  %s611_s27 = sshll.u32 %s686_s16, 4  ;;  %s612_s27 = int_to_ptr.vmem [resolvable:$false] %s611_s27 }
  0x5b   : > { %v480_v25 = vpack.c.bf16 %v219_v24, %v218_v23  ;;  %v483_v29 = vpack.c.bf16 %v221_v27, %v220_v26  ;;  %v404_v31 = vld [vmem:[%s912_s2] ss:$0 sm:$0xff]  ;;  %s613_s28 = scalar_lea.vmem %s612_s27, 256  ;;  %p614_p10 = scmp.lt.s32.totalorder %s868_s26, %s612_s27 }
  0x5c   : > { %466 = vmatpush3.bf16.msra.mxu0 %v465_v7  ;;  %547 = vlog2.f32 %v203_v18  ;;  %p609_p6 = pnand %p608_p4, %p798_p12  ;;  %p615_p13 = scmp.lt.s32.totalorder %s613_s28, %s607_s11 }
  0x5d   : > { %467 = vmatprep.subr.bf16.mxu0 %v683_v0 }
  0x5e   : > { %p610_p8 = pneg %p609_p6  ;;  %p616_p3 = por %p615_p13, %p614_p10 }
  0x60   : > { %469 = vmatpush3.bf16.msra.mxu0 %v468_v11  ;;  %p617_p7 = pnand %p616_p3, %p610_p8 }
  0x61   : > { %470 = vmatprep.subr.bf16.mxu0 %v683_v0 }
  0x64   : > { %472 = vmatpush3.bf16.msra.mxu0 %v471_v15 }
  0x65   : > { %473 = vmatprep.subr.bf16.mxu0 %v683_v0 }
  0x66   : > { %v548_v28 = vpop.eup %547 }
  0x67   : > { %v205_v30 = vmul.f32 0.6931472, %v548_v28 }
  0x68   : > { %475 = vmatpush3.bf16.msra.mxu0 %v474_v19 }
  0x69   : > { %476 = vmatprep.subr.bf16.mxu0 %v683_v0 }
  0x6c   : > { %478 = vmatpush3.bf16.msra.mxu0 %v477_v22 }
  0x6d   : > { %479 = vmatprep.subr.bf16.mxu0 %v683_v0 }
  0x70   : > { %481 = vmatpush3.bf16.msra.mxu0 %v480_v25 }
  0x71   : > { %482 = vmatprep.subr.bf16.mxu0 %v683_v0 }
  0x74   : > { %484 = vmatpush3.bf16.msra.mxu0 %v483_v29 }
  0x77   : > { %459 = vmatmul.mubr.f32.vlgmr.msra.gmra.mrb[0].mxu0 %v205_v30 }
 0x14a   : > { %v295_v32 = vpop.f32.mrb[0].mxu0 }
 0x14b   : > { %v296_v33 = vadd.f32 %v404_v31, %v295_v32  ;;  %v460_v34 = vpop.f32.mrb[1].mxu0 }
 0x14d   : > { %299 = vst [vmem:[%s200_s25] sm:$0xff] %v296_v33 }
 0x14e   : > { %620 = shalt.err (!%p617_p7)
}
 0x14f   : > { %s621_s29 = scalar_lea.hbm %s866_s9, 128  ;;  %s625_s22 = scalar_lea.hbm %s913_s3, 256 }
 0x150   : > { %p622_p9 = scmp.ne.s32.totalorder %s866_s9, %s621_s29  ;;  %p626_p0 = scmp.lt.u32.totalorder %s866_s9, %s913_s3 }
 0x151   : > { %p627_p11 = scmp.lt.u32.totalorder %s625_s22, %s621_s29  ;;  %p629_p4 = scmp.lt.u32.totalorder %s621_s29, %s866_s9 }
 0x152   : > { %p623_p2 = pnand %p622_p9, %p798_p12 }
 0x153   : > { %p628_p1 = por %p627_p11, %p626_p0 }
 0x154   : > { %p624_p5 = pneg %p623_p2 }
 0x155   : > { %p630_p6 = por %p629_p4, %p628_p1 }
 0x157   : > { %p631_p8 = pnand %p630_p6, %p624_p5 }
 0x159   : > { %634 = shalt.err (!%p631_p8)
}
 0x15a   : > { %491 = dma.vmem_to_hbm [thread:$0]  (%p798_p12), %s868_s26, 128, %s866_s9, %s301_s10  }
 0x15b PF: > { %s326_s18 = sand.u32 1, %s665_s12   ;;  %p928_p10 = scmp.ne.s32.totalorder %s918_s19, 0 }
 0x15c   : > { %p929_p13 = scmp.ge.s32.totalorder %s677_s15, 2  ;;  %s327_s20 = scalar_lea.sflag [#allocation4], %s326_s18 }
 0x15e   : > { %p502_p3 = pnand %p929_p13, %p928_p10 }
 0x160   : > { %660 = dma.done.wait (!%p502_p3), %s327_s20, 128  }
 0x161   : > { %662 = vsyncadd (!%p502_p3), %s327_s20, 4294967168  ;;  %p17_p7 = scmp.ge.s32.totalorder %s763_s24, 4   ;;  %s930_s12 = smov %s669_s13 }
 0x162   : > { %s931_s13 = smov %s673_s14  ;;  %s932_s14 = smov %s794_s17 }
 0x163   : > { %s933_s15 = smov %s763_s24  ;;  %19 = sbr.rel (!%p17_p7) target bundleno = 6 (0x6), region = 81 }
 0x16a   :  { %332 = vsyncpa [#allocation3], 1 }
 0x16b   :  { %334 = vsyncpa [#allocation3 + $0x1], 1 }
 0x16c   :  { %335 = vsyncpa [#allocation6], 1 }
 0x16d   :  { %336 = vsyncpa [#allocation4], 1 }
 0x16e   :  { %338 = vsyncpa [#allocation4 + $0x1], 1 }

</bundles_post_ra>
